<compile_context>
chip_gen: v7x
topology: tpu7x:2x2x1
jax: 0.10.0
libtpu: 0.0.40
codegen_flags: <defaults>
</compile_context>

<pallas_src>
import jax
import jax.numpy as jnp
from jax.experimental import pallas as pl
from jax.experimental.pallas import tpu as pltpu

LANES = 128
SUBLANES = 8
ACC_ROWS_WIDE = 32          # 4 independent partial-sum vreg chains / accumulator
TILE_ROWS_MAX = 8192        # 8192 x 128 f32 = 4 MiB per input block


def _tensorcores_per_chip() -> int:
    """Best-effort TensorCores-per-chip query; falls back to 1 (always safe)."""
    try:
        info = pltpu.get_tpu_info()
    except Exception:
        return 1
    for attr in ("num_cores", "core_count", "num_tensorcores"):
        v = getattr(info, attr, None)
        if isinstance(v, int) and v >= 1:
            return v
    return 1


def _row_reduce(x, tile_rows, acc_rows):
    """Reduce (tile_rows, LANES) -> (acc_rows, LANES) with leading-axis vreg adds."""
    if tile_rows >= acc_rows and tile_rows % acc_rows == 0:
        # acc_rows = 32 -> 4 independent add chains of length tile_rows/32.
        return x.reshape(tile_rows // acc_rows, acc_rows, LANES).sum(axis=0)
    # Tiny / oddly-sized single-tile fallback: put the (1, LANES) partial sum
    # in sublane 0 of the accumulator (VPU-only select, no pad/concat).
    s = jnp.sum(x, axis=0, keepdims=True)
    row0 = jax.lax.broadcasted_iota(jnp.int32, (acc_rows, LANES), 0) == 0
    return jnp.where(row0, jnp.broadcast_to(s, (acc_rows, LANES)), 0.0)


def _make_kernel(rows, tile_rows, acc_rows, steps_per_core, need_mask,
                 first_mask_block):
    def accumulate(acc_i_ref, acc_s_ref, o, t):
        acc_i_ref[...] += _row_reduce(o * t, tile_rows, acc_rows)
        acc_s_ref[...] += _row_reduce(o * o + t * t, tile_rows, acc_rows)

    def kernel(o_ref, t_ref, acc_i_ref, acc_s_ref):
        c = pl.program_id(0)           # core-split axis
        i = pl.program_id(1)           # reduction axis

        @pl.when(i == 0)
        def _():
            acc_i_ref[...] = jnp.zeros_like(acc_i_ref)
            acc_s_ref[...] = jnp.zeros_like(acc_s_ref)

        if not need_mask:
            # No partial / clamped blocks exist at all: pure fast path.
            accumulate(acc_i_ref, acc_s_ref,
                       o_ref[...].astype(jnp.float32),
                       t_ref[...].astype(jnp.float32))
        else:
            logical_block = c * steps_per_core + i

            # Fast path: fully-valid blocks pay zero masking cost.
            @pl.when(logical_block < first_mask_block)
            def _():
                accumulate(acc_i_ref, acc_s_ref,
                           o_ref[...].astype(jnp.float32),
                           t_ref[...].astype(jnp.float32))

            # Masked path: partial tail block and/or clamped-duplicate blocks
            # (the index_map clamps those onto the last real tile; the mask
            # zeroes their entire contribution — keep these two coupled).
            @pl.when(logical_block >= first_mask_block)
            def _():
                row_ids = (
                    jax.lax.broadcasted_iota(jnp.int32, (tile_rows, LANES), 0)
                    + logical_block * tile_rows
                )
                valid = row_ids < rows
                o = jnp.where(valid, o_ref[...].astype(jnp.float32), 0.0)
                t = jnp.where(valid, t_ref[...].astype(jnp.float32), 0.0)
                accumulate(acc_i_ref, acc_s_ref, o, t)

    return kernel


def my_loss(output, target, *, tile_rows_max=TILE_ROWS_MAX):
    assert output.shape == target.shape
    n = output.size

    # Lane-dense 2D slab in the NATIVE dtype; reshape of a contiguous ravel is
    # free. Only the rare n % 128 != 0 case pays a pad copy.
    # TODO(synk): the ragged-lane case could mask invalid lanes of the last row
    # in-kernel instead of padding, avoiding the extra HBM copy.
    padded_n = pl.cdiv(n, LANES) * LANES

    def to_slab(x):
        x = jnp.ravel(x)
        if padded_n != n:
            x = jnp.pad(x, (0, padded_n - n))
        return x.reshape(padded_n // LANES, LANES)

    o2 = to_slab(output)
    t2 = to_slab(target)
    rows = padded_n // LANES

    # Only split across cores when the chip really has 2 TensorCores (v7x);
    # on 1-TC chips the leading axis is size 1 (no tile halving, no masking).
    detected = _tensorcores_per_chip()
    num_core_split = 2 if detected == 2 else 1

    # Tile size: as large as possible (amortize per-step overhead), a multiple
    # of 8 when we can, never larger than the array itself.
    per_core_rows = pl.cdiv(rows, num_core_split)
    tile_rows = min(tile_rows_max, pl.cdiv(per_core_rows, SUBLANES) * SUBLANES)
    tile_rows = min(tile_rows, rows)

    acc_rows = ACC_ROWS_WIDE if tile_rows % ACC_ROWS_WIDE == 0 else SUBLANES

    total_tiles = pl.cdiv(rows, tile_rows)
    steps = pl.cdiv(total_tiles, num_core_split)
    need_mask = (num_core_split * steps * tile_rows) != rows
    first_mask_block = rows // tile_rows     # first logical block needing a mask
    last_tile = total_tiles - 1

    def in_map(c, i):
        # Clamp redundant (fully out-of-range) blocks onto the last valid tile;
        # their contribution is zeroed by the in-kernel masked path.
        return (jnp.minimum(c * steps + i, last_tile), 0)

    kernel = _make_kernel(rows, tile_rows, acc_rows, steps, need_mask,
                          first_mask_block)

    itemsize = jnp.dtype(output.dtype).itemsize
    acc_bytes = num_core_split * acc_rows * LANES * 4
    # 2 inputs x 2 pipeline buffers x block bytes + outputs + headroom.
    vmem_needed = 2 * 2 * tile_rows * LANES * itemsize + 2 * acc_bytes + (4 << 20)
    vmem_limit_bytes = int(min(48 << 20, max(32 << 20, vmem_needed)))

    if num_core_split > 1:
        dim_sem = (pltpu.CORE_PARALLEL, pltpu.ARBITRARY)
    else:
        dim_sem = (pltpu.ARBITRARY, pltpu.ARBITRARY)

    cost = pl.CostEstimate(
        flops=6 * n,
        transcendentals=0,
        bytes_accessed=2 * n * itemsize + 2 * acc_bytes,
    )

    acc_i, acc_s = pl.pallas_call(
        kernel,
        out_shape=[
            jax.ShapeDtypeStruct((num_core_split * acc_rows, LANES), jnp.float32),
            jax.ShapeDtypeStruct((num_core_split * acc_rows, LANES), jnp.float32),
        ],
        grid_spec=pltpu.PrefetchScalarGridSpec(
            num_scalar_prefetch=0,
            grid=(num_core_split, steps),
            in_specs=[
                pl.BlockSpec((tile_rows, LANES), in_map),
                pl.BlockSpec((tile_rows, LANES), in_map),
            ],
            out_specs=[
                pl.BlockSpec((acc_rows, LANES), lambda c, i: (c, 0)),
                pl.BlockSpec((acc_rows, LANES), lambda c, i: (c, 0)),
            ],
        ),
        compiler_params=pltpu.CompilerParams(
            dimension_semantics=dim_sem,
            vmem_limit_bytes=vmem_limit_bytes,
        ),
        cost_estimate=cost,
    )(o2, t2)

    # Tiny final reduce (at most 2 x (64,128) floats) done in plain JAX.
    intersection = jnp.sum(acc_i)
    sq_sum = jnp.sum(acc_s)
    iou = sq_sum - intersection
    # NOTE: like the PyTorch reference, no eps clamp; all-zero inputs -> NaN
    # in both implementations.
    return 1.0 - intersection / iou


def my_loss_ref(output, target):
    o = output.astype(jnp.float32)
    t = target.astype(jnp.float32)
    intersection = jnp.sum(o * t)
    iou = jnp.sum(o * o) + jnp.sum(t * t) - intersection
    return 1.0 - intersection / iou


if __name__ == "__main__":
    key = jax.random.PRNGKey(0)
    k1, k2, k3, k4 = jax.random.split(key, 4)

    # Primary: NCHW segmentation-style inputs.
    shape = (2, 4, 16, 16)
    output = jax.nn.sigmoid(jax.random.normal(k1, shape, dtype=jnp.float32))
    target = (jax.random.uniform(k2, shape) > 0.5).astype(jnp.float32)

    loss = my_loss(output, target)
    jax.block_until_ready(loss)
    ref = my_loss_ref(output, target)
    assert jnp.allclose(loss, ref, rtol=1e-5, atol=1e-6), (loss, ref)

    # Masked-path regression test: several tiles, rows % tile_rows != 0 and
    # odd tile count — exercises the clamp + in-kernel mask coupling.
    o_m = jax.nn.sigmoid(jax.random.normal(k3, (21, 128), dtype=jnp.float32))
    t_m = (jax.random.uniform(k4, (21, 128)) > 0.5).astype(jnp.float32)
    l_m = my_loss(o_m, t_m, tile_rows_max=8)
    jax.block_until_ready(l_m)
    assert jnp.allclose(l_m, my_loss_ref(o_m, t_m), rtol=1e-5, atol=1e-6)

    # Ragged lane count (n % 128 != 0) -> wrapper pad path.
    o_r = jax.nn.sigmoid(jax.random.normal(k1, (2, 3, 13, 17), dtype=jnp.float32))
    t_r = (jax.random.uniform(k2, (2, 3, 13, 17)) > 0.5).astype(jnp.float32)
    l_r = my_loss(o_r, t_r)
    jax.block_until_ready(l_r)
    assert jnp.allclose(l_r, my_loss_ref(o_r, t_r), rtol=1e-5, atol=1e-6)

    # bf16 inputs stream in bf16 (half the HBM traffic), accumulate in f32.
    o_b = output.astype(jnp.bfloat16)
    t_b = target.astype(jnp.bfloat16)
    l_b = my_loss(o_b, t_b)
    jax.block_until_ready(l_b)
    assert jnp.allclose(l_b, my_loss_ref(o_b, t_b), rtol=1e-4, atol=1e-5)

    print("KERNEL_OK")
</pallas_src>

<mosaic_0001>
module attributes {stable_mosaic.version = 11 : i64} {
  func.func @kernel(%arg0: i32, %arg1: i32, %arg2: memref<16x128xf32, #tpu.memory_space<vmem>>, %arg3: memref<16x128xf32, #tpu.memory_space<vmem>>, %arg4: memref<8x128xf32, #tpu.memory_space<vmem>>, %arg5: memref<8x128xf32, #tpu.memory_space<vmem>>) attributes {dimension_semantics = [#tpu.dimension_semantics<arbitrary>, #tpu.dimension_semantics<arbitrary>], iteration_bounds = array<i64: 1, 1>, scalar_prefetch = 0 : i64, scratch_operands = 0 : i64, tpu.core_type = #tpu.core_type<tc>, window_params = [{transform_indices = @transform_0, window_bounds = array<i64: 16, 128>}, {transform_indices = @transform_1, window_bounds = array<i64: 16, 128>}, {transform_indices = @transform_2, window_bounds = array<i64: 8, 128>}, {transform_indices = @transform_3, window_bounds = array<i64: 8, 128>}]} {
    %c0_i32 = arith.constant 0 : i32
    %0 = arith.cmpi eq, %arg1, %c0_i32 : i32
    %1 = arith.extui %0 : i1 to i32
    %c0_i32_0 = arith.constant 0 : i32
    %2 = arith.cmpi ne, %1, %c0_i32_0 : i32
    scf.if %2 {
      %cst_13 = arith.constant 0.000000e+00 : f32
      %19 = vector.broadcast %cst_13 : f32 to vector<8x128xf32>
      %c0_14 = arith.constant 0 : index
      %c0_15 = arith.constant 0 : index
      %20 = vector.load %arg4[%c0_14, %c0_15] : memref<8x128xf32, #tpu.memory_space<vmem>>, vector<8x128xf32>
      tpu.vector_store %arg4[%c0_14, %c0_15], %19 {strides = array<i32>} : memref<8x128xf32, #tpu.memory_space<vmem>>, vector<8x128xf32>,
      %cst_16 = arith.constant 0.000000e+00 : f32
      %21 = vector.broadcast %cst_16 : f32 to vector<8x128xf32>
      %c0_17 = arith.constant 0 : index
      %c0_18 = arith.constant 0 : index
      %22 = vector.load %arg5[%c0_17, %c0_18] : memref<8x128xf32, #tpu.memory_space<vmem>>, vector<8x128xf32>
      tpu.vector_store %arg5[%c0_17, %c0_18], %21 {strides = array<i32>} : memref<8x128xf32, #tpu.memory_space<vmem>>, vector<8x128xf32>,
    } else {
    }
    %c0 = arith.constant 0 : index
    %c0_1 = arith.constant 0 : index
    %3 = vector.load %arg2[%c0, %c0_1] : memref<16x128xf32, #tpu.memory_space<vmem>>, vector<16x128xf32>
    %c0_2 = arith.constant 0 : index
    %c0_3 = arith.constant 0 : index
    %4 = vector.load %arg3[%c0_2, %c0_3] : memref<16x128xf32, #tpu.memory_space<vmem>>, vector<16x128xf32>
    %c0_4 = arith.constant 0 : index
    %c0_5 = arith.constant 0 : index
    %5 = vector.load %arg4[%c0_4, %c0_5] : memref<8x128xf32, #tpu.memory_space<vmem>>, vector<8x128xf32>
    %6 = arith.mulf %3, %4 : vector<16x128xf32>
    %7 = vector.shape_cast %6 : vector<16x128xf32> to vector<2x8x128xf32>
    %cst = arith.constant dense<0.000000e+00> : vector<8x128xf32>
    %8 = vector.multi_reduction <add>, %7, %cst [0] : vector<2x8x128xf32> to vector<8x128xf32>
    %9 = arith.addf %5, %8 : vector<8x128xf32>
    %c0_6 = arith.constant 0 : index
    %c0_7 = arith.constant 0 : index
    %10 = vector.load %arg4[%c0_6, %c0_7] : memref<8x128xf32, #tpu.memory_space<vmem>>, vector<8x128xf32>
    tpu.vector_store %arg4[%c0_6, %c0_7], %9 {strides = array<i32>} : memref<8x128xf32, #tpu.memory_space<vmem>>, vector<8x128xf32>,
    %c0_8 = arith.constant 0 : index
    %c0_9 = arith.constant 0 : index
    %11 = vector.load %arg5[%c0_8, %c0_9] : memref<8x128xf32, #tpu.memory_space<vmem>>, vector<8x128xf32>
    %12 = arith.mulf %3, %3 : vector<16x128xf32>
    %13 = arith.mulf %4, %4 : vector<16x128xf32>
    %14 = arith.addf %12, %13 : vector<16x128xf32>
    %15 = vector.shape_cast %14 : vector<16x128xf32> to vector<2x8x128xf32>
    %cst_10 = arith.constant dense<0.000000e+00> : vector<8x128xf32>
    %16 = vector.multi_reduction <add>, %15, %cst_10 [0] : vector<2x8x128xf32> to vector<8x128xf32>
    %17 = arith.addf %11, %16 : vector<8x128xf32>
    %c0_11 = arith.constant 0 : index
    %c0_12 = arith.constant 0 : index
    %18 = vector.load %arg5[%c0_11, %c0_12] : memref<8x128xf32, #tpu.memory_space<vmem>>, vector<8x128xf32>
    tpu.vector_store %arg5[%c0_11, %c0_12], %17 {strides = array<i32>} : memref<8x128xf32, #tpu.memory_space<vmem>>, vector<8x128xf32>,
    return
  }
  func.func @transform_0(%arg0: i32, %arg1: i32) -> (i32, i32) {
    %c1_i32 = arith.constant 1 : i32
    %0 = arith.muli %arg0, %c1_i32 : i32
    %1 = arith.addi %0, %arg1 : i32
    %c0_i32 = arith.constant 0 : i32
    %2 = arith.minsi %1, %c0_i32 : i32
    %c0_i32_0 = arith.constant 0 : i32
    %c0_i32_1 = arith.constant 0 : i32
    return %2, %c0_i32_0 : i32, i32
  }
  func.func @transform_1(%arg0: i32, %arg1: i32) -> (i32, i32) {
    %c1_i32 = arith.constant 1 : i32
    %0 = arith.muli %arg0, %c1_i32 : i32
    %1 = arith.addi %0, %arg1 : i32
    %c0_i32 = arith.constant 0 : i32
    %2 = arith.minsi %1, %c0_i32 : i32
    %c0_i32_0 = arith.constant 0 : i32
    %c0_i32_1 = arith.constant 0 : i32
    return %2, %c0_i32_0 : i32, i32
  }
  func.func @transform_2(%arg0: i32, %arg1: i32) -> (i32, i32) {
    %c0_i32 = arith.constant 0 : i32
    %c0_i32_0 = arith.constant 0 : i32
    return %arg0, %c0_i32 : i32, i32
  }
  func.func @transform_3(%arg0: i32, %arg1: i32) -> (i32, i32) {
    %c0_i32 = arith.constant 0 : i32
    %c0_i32_0 = arith.constant 0 : i32
    return %arg0, %c0_i32 : i32, i32
  }
}

</mosaic_0001>

<bundles_post_ra>
// kernel: tpu_custom_call.1
= control target key start
LH: loop header
LB: loop body
LE: loop exit
PB: predicated region body
PF: predicated region fallthrough
CT: control target
= control target key end

     0   :  { %9 = vsyncpa [#allocation3], 0  ;;  %s300_s0 = inlined_call_operand.hbm [shape: f32[16,128], index: 0, kind: input, shape index: {}]   ;;  %s301_s1 = inlined_call_operand.hbm [shape: f32[16,128], index: 1, kind: input, shape index: {}]   ;;  %s302_s2 = inlined_call_operand.hbm [shape: f32[8,128], index: 2, kind: output, shape index: {0}]   ;;  %s303_s3 = inlined_call_operand.hbm [shape: f32[8,128], index: 3, kind: output, shape index: {1}]  }
   0x1   :  { %10 = vsyncpa [#allocation6], 0 }
   0x2   :  { %11 = vsyncpa [#allocation4], 0 }
   0x3   :  { %12 = vsyncpa [#allocation9], 0  ;;  %s226_s12 = smov [#allocation2]   ;;  %s130_s16 = scalar_lea.hbm %s300_s0, 256 }
   0x4   :  { %s24_s13 = sshll.u32 %s226_s12, 4  ;;  %p131_p0 = scmp.ne.s32.totalorder %s300_s0, %s130_s16  ;;  %s25_s13 = int_to_ptr.vmem [resolvable:$true] %s24_s13 }
   0x5   :  { %p134_p1 = scmp.lt.u32.totalorder %s130_s16, %s300_s0 }
   0x7   :  { %p136_p2 = pnand %p134_p1, %p131_p0 }
   0x9   :  { %139 = shalt.err (!%p136_p2)
}
   0xa   :  { %s140_s21 = scalar_lea.vmem %s25_s13, 256  ;;  %p145_p4 = scmp.lt.s32.totalorder %s25_s13, %s25_s13 }
   0xb   :  { %p141_p3 = scmp.ne.s32.totalorder %s25_s13, %s140_s21  ;;  %p146_p5 = scmp.lt.s32.totalorder %s140_s21, %s140_s21 }
   0xd   :  { %p147_p6 = por %p146_p5, %p145_p4 }
   0xf   :  { %p148_p7 = pnand %p147_p6, %p141_p3 }
  0x11   :  { %151 = shalt.err (!%p148_p7)
}
  0x12   :  { %s227_s22 = smov 128   ;;  %s228_s23 = smov 8  }
  0x13   :  { %30 = dma.hbm_to_vmem [thread:$0]  %s300_s0, 256, %s25_s13, [#allocation3], %s227_s22, %s227_s22, %s228_s23  }
  0x14   :  { %s229_s26 = smov [#allocation5]   ;;  %s152_s30 = scalar_lea.hbm %s301_s1, 256 }
  0x15   :  { %s42_s27 = sshll.u32 %s229_s26, 4  ;;  %p153_p8 = scmp.ne.s32.totalorder %s301_s1, %s152_s30  ;;  %s43_s27 = int_to_ptr.vmem [resolvable:$true] %s42_s27 }
  0x16   :  { %p156_p9 = scmp.lt.u32.totalorder %s152_s30, %s301_s1 }
  0x18   :  { %p158_p10 = pnand %p156_p9, %p153_p8 }
  0x1a   :  { %161 = shalt.err (!%p158_p10)
}
  0x1b   :  { %s162_s8 = scalar_lea.vmem %s43_s27, 256  ;;  %p167_p12 = scmp.lt.s32.totalorder %s43_s27, %s43_s27 }
  0x1c   :  { %p163_p11 = scmp.ne.s32.totalorder %s43_s27, %s162_s8  ;;  %p168_p13 = scmp.lt.s32.totalorder %s162_s8, %s162_s8 }
  0x1e   :  { %p169_p0 = por %p168_p13, %p167_p12 }
  0x20   :  { %p170_p1 = pnand %p169_p0, %p163_p11 }
  0x22   :  { %173 = shalt.err (!%p170_p1)
}
  0x23   :  { %48 = dma.hbm_to_vmem [thread:$0]  %s301_s1, 256, %s43_s27, [#allocation6], %s227_s22, %s227_s22, %s228_s23  }
  0x24   :  { %218 = dma.done.wait [#allocation3], 256  }
  0x25   :  { %219 = vsyncadd [#allocation3], 4294967040 }
  0x26   :  { %220 = dma.done.wait [#allocation6], 256  }
  0x27   :  { %221 = vsyncadd [#allocation6], 4294967040  ;;  %v69_v0 = vld [vmem:[#allocation2] sm:$0xff]  ;;  %v70_v1 = vld [vmem:[#allocation2 + $0x8] sm:$0xff]  ;;  %s230_s10 = smov [#allocation7]   ;;  %s231_s1 = smov [#allocation8]  }
  0x28   :  { %v71_v2 = vld [vmem:[#allocation5] sm:$0xff]  ;;  %v72_v3 = vld [vmem:[#allocation5 + $0x8] sm:$0xff]  ;;  %v80_v5 = vmul.f32 %v69_v0, %v69_v0  ;;  %v81_v6 = vmul.f32 %v70_v1, %v70_v1  ;;  %s95_s11 = sshll.u32 %s230_s10, 4  ;;  %s105_s12 = sshll.u32 %s231_s1, 4  ;;  %s96_s11 = int_to_ptr.vmem [resolvable:$true] %s95_s11  ;;  %s106_s12 = int_to_ptr.vmem [resolvable:$true] %s105_s12 }
  0x29   :  { %v74_v4 = vmul.f32 %v71_v2, %v69_v0  ;;  %v82_v7 = vmul.f32 %v71_v2, %v71_v2  ;;  %v75_v8 = vmul.f32 %v72_v3, %v70_v1  ;;  %v83_v9 = vmul.f32 %v72_v3, %v72_v3  ;;  %s174_s13 = scalar_lea.vmem %s96_s11, 128  ;;  %p179_p3 = scmp.lt.s32.totalorder %s96_s11, %s96_s11 }
  0x2a   :  { %p175_p2 = scmp.ne.s32.totalorder %s96_s11, %s174_s13  ;;  %p180_p4 = scmp.lt.s32.totalorder %s174_s13, %s174_s13 }
  0x2b   :  { %v84_v10 = vadd.f32 %v82_v7, %v80_v5  ;;  %v76_v11 = vadd.f32 %v75_v8, %v74_v4  ;;  %v85_v12 = vadd.f32 %v83_v9, %v81_v6 }
  0x2c   :  { %p181_p5 = por %p180_p4, %p179_p3 }
  0x2d   :  { %v86_v13 = vadd.f32 %v85_v12, %v84_v10  ;;  %78 = vst [vmem:[#allocation7] sm:$0xff] %v76_v11 }
  0x2e   :  { %p182_p6 = pnand %p181_p5, %p175_p2 }
  0x30   :  { %185 = shalt.err (!%p182_p6)
}
  0x31   :  { %s186_s16 = scalar_lea.hbm %s302_s2, 128 }
  0x32   :  { %p187_p7 = scmp.ne.s32.totalorder %s302_s2, %s186_s16  ;;  %p190_p8 = scmp.lt.u32.totalorder %s186_s16, %s302_s2 }
  0x34   :  { %p192_p9 = pnand %p190_p8, %p187_p7 }
  0x36   :  { %195 = shalt.err (!%p192_p9)
}
  0x37   :  { %98 = dma.vmem_to_hbm [thread:$0]  %s96_s11, 128, %s302_s2, [#allocation4]   ;;  %88 = vst [vmem:[#allocation8] sm:$0xff] %v86_v13 }
  0x38   :  { %s196_s23 = scalar_lea.vmem %s106_s12, 128  ;;  %p201_p11 = scmp.lt.s32.totalorder %s106_s12, %s106_s12 }
  0x39   :  { %p197_p10 = scmp.ne.s32.totalorder %s106_s12, %s196_s23  ;;  %p202_p12 = scmp.lt.s32.totalorder %s196_s23, %s196_s23 }
  0x3b   :  { %p203_p13 = por %p202_p12, %p201_p11 }
  0x3d   :  { %p204_p0 = pnand %p203_p13, %p197_p10 }
  0x3f   :  { %207 = shalt.err (!%p204_p0)
}
  0x40   :  { %s208_s26 = scalar_lea.hbm %s303_s3, 128 }
  0x41   :  { %p209_p1 = scmp.ne.s32.totalorder %s303_s3, %s208_s26  ;;  %p212_p2 = scmp.lt.u32.totalorder %s208_s26, %s303_s3 }
  0x43   :  { %p214_p3 = pnand %p212_p2, %p209_p1 }
  0x45   :  { %217 = shalt.err (!%p214_p3)
}
  0x46   :  { %108 = dma.vmem_to_hbm [thread:$0]  %s106_s12, 128, %s303_s3, [#allocation9]  }
  0x47   :  { %222 = dma.done.wait [#allocation4], 128  }
  0x48   :  { %223 = vsyncadd [#allocation4], 4294967168 }
  0x49   :  { %224 = dma.done.wait [#allocation9], 128  }
  0x4a   :  { %225 = vsyncadd [#allocation9], 4294967168 }
  0x4b   :  { %115 = vsyncpa [#allocation3], 1 }
  0x4c   :  { %116 = vsyncpa [#allocation6], 1 }
  0x4d   :  { %117 = vsyncpa [#allocation4], 1 }
  0x4e   :  { %118 = vsyncpa [#allocation9], 1 }

</bundles_post_ra>
